<compile_context>
chip_gen: v5e
topology: v5e:2x2
jax: 0.10.0
libtpu: 0.0.40
codegen_flags: <defaults>
</compile_context>

<pallas_src>
import jax
import jax.numpy as jnp
from jax.experimental import pallas as pl
from jax.experimental.pallas import tpu as pltpu


def _upsample_expand_kernel(x_ref, s_ref, o_ref):
    # x_ref: (Nb, C_in, H_in, W_in)  whole channel/spatial block for Nb batch elements
    # s_ref: (W_in, L)               column one-hot tiled fh times (L = fh*size):
    #                                does nearest col-selection AND row replication
    # o_ref: (Nb, C_out, H_in, L)    output tile; written with ONE full-tile store
    nb, c_in, h_in, w_in = x_ref.shape
    _, c_out, _, l = o_ref.shape
    rep = c_out // c_in

    x = x_ref[...]
    if x.dtype != s_ref.dtype:
        # Non-floating inputs: upcast before the dot (exact for |x| < 2**24).
        x = x.astype(s_ref.dtype)
    # Collapse leading dims into the sublane dim (no-op relayout when H_in % 8 == 0).
    x2d = x.reshape(nb * c_in * h_in, w_in)

    # (Nb*C_in*H_in, W_in) @ (W_in, fh*size): nearest column selection with the row
    # replication folded into the RHS lane dim.  f32 accumulation is exact (0/1 RHS).
    up = jnp.dot(x2d, s_ref[...], preferred_element_type=jnp.float32)
    up = up.astype(o_ref.dtype).reshape(nb, c_in, 1, h_in, l)

    # Channel-interleaved repeat C_in -> C_out: broadcast along a leading axis, then a
    # leading-dims-only reshape; single unmasked full-tile store.
    up = jnp.broadcast_to(up, (nb, c_in, rep, h_in, l))
    o_ref[...] = up.reshape(nb, c_out, h_in, l)


def _pick_batch_block(n: int, per_n_bytes: int,
                      target_bytes: int = 2 * 1024 * 1024,
                      min_steps: int = 4) -> int:
    """Largest divisor nb of n such that the per-step block stays under ~target_bytes
    while keeping at least min(min_steps, n) grid steps (v7x megacore / pipelining)."""
    best = 1
    for nb in range(1, n + 1):
        if n % nb != 0:
            continue
        if nb > 1 and nb * per_n_bytes > target_bytes:
            continue
        if n // nb < min(min_steps, n):
            continue
        best = nb
    return best


def channel_expansion(x: jax.Array, size: int, _in: int, _out: int) -> jax.Array:
    """Nearest upsample to (size, size) + interleaved channel repeat C -> C*(out/in). NCHW."""
    assert _out % _in == 0 and _out >= _in, "need _out a positive multiple of _in"
    rep = _out // _in
    N, C, H_in, W_in = x.shape
    assert C == _in
    assert size % H_in == 0, "integer row upsample factor required (size % H_in == 0)"
    fh = size // H_in
    L = fh * size                                     # lanes per (c_out, source-row)

    compute_dtype = x.dtype if jnp.issubdtype(x.dtype, jnp.floating) else jnp.float32

    # Nearest-neighbor source columns (PyTorch UpsamplingNearest2d floor semantics);
    # fully general in the column direction.
    src_cols = (jnp.arange(size) * W_in) // size                    # (size,)
    S = jax.nn.one_hot(src_cols, W_in, dtype=compute_dtype).T       # (W_in, size)
    S_rep = jnp.tile(S, (1, fh))                                    # (W_in, L)

    itemsize = x.dtype.itemsize
    per_n_bytes = (C * H_in * W_in + _out * H_in * L) * itemsize
    nb = _pick_batch_block(N, per_n_bytes)
    grid = (N // nb,)

    cost = pl.CostEstimate(
        flops=2 * N * C * H_in * W_in * L,            # tiny selection matmul
        transcendentals=0,
        bytes_accessed=int((N * C * H_in * W_in + N * _out * H_in * L) * itemsize
                           + W_in * L * jnp.dtype(compute_dtype).itemsize),
    )

    out = pl.pallas_call(
        _upsample_expand_kernel,
        out_shape=jax.ShapeDtypeStruct((N, _out, H_in, L), x.dtype),
        grid_spec=pltpu.PrefetchScalarGridSpec(
            num_scalar_prefetch=0,
            grid=grid,
            in_specs=[
                # Nb batch elements per step; input fetched exactly once.
                pl.BlockSpec((nb, C, H_in, W_in), lambda g: (g, 0, 0, 0)),
                # Tiny factored selection operand, same block every step (~KBs).
                pl.BlockSpec((W_in, L), lambda g: (0, 0)),
            ],
            out_specs=pl.BlockSpec((nb, _out, H_in, L), lambda g: (g, 0, 0, 0)),
        ),
        compiler_params=pltpu.CompilerParams(
            dimension_semantics=("parallel",)),
        cost_estimate=cost,
    )(x, S_rep)

    # Free row-major regrouping: (N, C_out, H_in, fh*size) -> (N, C_out, size, size).
    return out.reshape(N, _out, size, size)


def _reference(x: jax.Array, size: int, _in: int, _out: int) -> jax.Array:
    """Pure-JAX reference matching the PyTorch forward exactly."""
    rep = _out // _in
    N, C, H_in, W_in = x.shape
    rows = (jnp.arange(size) * H_in) // size
    cols = (jnp.arange(size) * W_in) // size
    up = x[:, :, rows][:, :, :, cols]                  # nearest upsample
    idx = jnp.repeat(jnp.arange(C), rep)               # [0,0,...,1,1,...]
    return up[:, idx]


if __name__ == "__main__":
    # Small shapes: batch=2, _in=4 channels, 8x8 spatial, upsample to size=16,
    # expand channels to _out=8 (rep=2).
    N, _in, H, W = 2, 4, 8, 8
    size, _out = 16, 8

    key = jax.random.PRNGKey(0)
    x = jax.random.normal(key, (N, _in, H, W), dtype=jnp.float32)

    y = jax.block_until_ready(channel_expansion(x, size, _in, _out))

    y_ref = _reference(x, size, _in, _out)
    assert y.shape == (N, _out, size, size), y.shape
    assert jnp.allclose(y, y_ref, atol=1e-6, rtol=1e-6), "mismatch vs reference"

    print("KERNEL_OK")
</pallas_src>

<mosaic_0001>
module attributes {stable_mosaic.version = 11 : i64} {
  func.func @_upsample_expand_kernel(%arg0: i32, %arg1: memref<1x4x8x8xf32, #tpu.memory_space<vmem>>, %arg2: memref<8x32xf32, #tpu.memory_space<vmem>>, %arg3: memref<1x8x8x32xf32, #tpu.memory_space<vmem>>) attributes {dimension_semantics = [#tpu.dimension_semantics<parallel>], iteration_bounds = array<i64: 2>, scalar_prefetch = 0 : i64, scratch_operands = 0 : i64, tpu.core_type = #tpu.core_type<tc>, window_params = [{transform_indices = @transform_0, window_bounds = array<i64: 1, 4, 8, 8>}, {pipeline_mode = #tpu.pipeline_mode<synchronous>, transform_indices = @transform_1, window_bounds = array<i64: 8, 32>}, {transform_indices = @transform_2, window_bounds = array<i64: 1, 8, 8, 32>}]} {
    %c0 = arith.constant 0 : index
    %c0_0 = arith.constant 0 : index
    %c0_1 = arith.constant 0 : index
    %c0_2 = arith.constant 0 : index
    %0 = vector.load %arg1[%c0, %c0_0, %c0_1, %c0_2] : memref<1x4x8x8xf32, #tpu.memory_space<vmem>>, vector<1x4x8x8xf32>
    %1 = vector.shape_cast %0 : vector<1x4x8x8xf32> to vector<32x8xf32>
    %c0_3 = arith.constant 0 : index
    %c0_4 = arith.constant 0 : index
    %2 = vector.load %arg2[%c0_3, %c0_4] : memref<8x32xf32, #tpu.memory_space<vmem>>, vector<8x32xf32>
    %cst = arith.constant dense<0.000000e+00> : vector<32x32xf32>
    %3 = tpu.matmul %1, %2, %cst {dimension_numbers = #tpu.dot_dimension_numbers<[1], [0], [0], [1], [0, 0, 1, 1], [], []>} : vector<32x8xf32>, vector<8x32xf32>, vector<32x32xf32> -> vector<32x32xf32>
    %4 = vector.shape_cast %3 : vector<32x32xf32> to vector<1x4x1x8x32xf32>
    %5 = vector.shape_cast %4 : vector<1x4x1x8x32xf32> to vector<1x4x1x8x32xf32>
    %6 = vector.broadcast %5 : vector<1x4x1x8x32xf32> to vector<1x4x2x8x32xf32>
    %7 = vector.shape_cast %6 : vector<1x4x2x8x32xf32> to vector<1x8x8x32xf32>
    %c0_5 = arith.constant 0 : index
    %c0_6 = arith.constant 0 : index
    %c0_7 = arith.constant 0 : index
    %c0_8 = arith.constant 0 : index
    %8 = vector.load %arg3[%c0_5, %c0_6, %c0_7, %c0_8] : memref<1x8x8x32xf32, #tpu.memory_space<vmem>>, vector<1x8x8x32xf32>
    tpu.vector_store %arg3[%c0_5, %c0_6, %c0_7, %c0_8], %7 {strides = array<i32>} : memref<1x8x8x32xf32, #tpu.memory_space<vmem>>, vector<1x8x8x32xf32>,
    return
  }
  func.func @transform_0(%arg0: i32) -> (i32, i32, i32, i32) {
    %c0_i32 = arith.constant 0 : i32
    %c0_i32_0 = arith.constant 0 : i32
    %c0_i32_1 = arith.constant 0 : i32
    %c0_i32_2 = arith.constant 0 : i32
    return %arg0, %c0_i32, %c0_i32_0, %c0_i32_1 : i32, i32, i32, i32
  }
  func.func @transform_1(%arg0: i32) -> (i32, i32) {
    %c0_i32 = arith.constant 0 : i32
    %c0_i32_0 = arith.constant 0 : i32
    %c0_i32_1 = arith.constant 0 : i32
    return %c0_i32, %c0_i32_0 : i32, i32
  }
  func.func @transform_2(%arg0: i32) -> (i32, i32, i32, i32) {
    %c0_i32 = arith.constant 0 : i32
    %c0_i32_0 = arith.constant 0 : i32
    %c0_i32_1 = arith.constant 0 : i32
    %c0_i32_2 = arith.constant 0 : i32
    return %arg0, %c0_i32, %c0_i32_0, %c0_i32_1 : i32, i32, i32, i32
  }
}

</mosaic_0001>

<bundles_post_ra>
// kernel: tpu_custom_call.1
= control target key start
LH: loop header
LB: loop body
LE: loop exit
PB: predicated region body
PF: predicated region fallthrough
CT: control target
= control target key end

     0   :  { %7 = vsyncpa [#allocation3], 0  ;;  %s723_s0 = inlined_call_operand.hbm [shape: f32[2,4,8,8], index: 0, kind: input, shape index: {}]   ;;  %s724_s1 = inlined_call_operand.hbm [shape: f32[8,32], index: 1, kind: input, shape index: {}]   ;;  %s725_s2 = inlined_call_operand.hbm [shape: f32[2,8,8,32], index: 2, kind: output, shape index: {}]  }
   0x1   :  { %9 = vsyncpa [#allocation3 + $0x1], 0 }
   0x2   :  { %10 = vsyncpa [#allocation6], 0 }
   0x3   :  { %11 = vsyncpa [#allocation4], 0 }
   0x4   :  { %13 = vsyncpa [#allocation4 + $0x1], 0  ;;  %s572_s9 = smov 0   ;;  %s574_s10 = smov 0  }
   0x5   :  { %s576_s11 = smov 0   ;;  %s578_s12 = smov 0  }
   0x6 LB: > { %s593_s13 = sadd.s32 4294967295, %s550_s12   ;;  %s334_s14 = sadd.s32 4294967294, %s550_s12   ;;  %s550_s12 = sphi %s578_s12, %s736_s12   ;;  %s546_s11 = sphi %s576_s11, %s735_s11   ;;  %s542_s10 = sphi %s574_s10, %s734_s10   ;;  %s538_s9 = sphi %s572_s9, %s733_s9  }
   0x7   : > { %s597_s15 = sadd.s32 1, %s550_s12   ;;  %s26_s16 = sadd.s32 1, %s546_s11 }
   0x8   : > { %s23_s17 = ssub.s32 %s550_s12, %s597_s15  ;;  %p33_p0 = scmp.ne.s32.totalorder %s546_s11, %s542_s10 }
   0x9   : > { %p24_p1 = scmp.eq.s32.totalorder %s23_s17, 0  ;;  %p34_p2 = scmp.eq.s32.totalorder %s550_s12, 0 }
   0xa   : > { %p39_p3 = scmp.ne.s32.totalorder %s542_s10, %s538_s9  ;;  %p40_p4 = scmp.eq.s32.totalorder %s593_s13, 0 }
   0xb   : > { %s609_s18 = scalar_select %p24_p1, %s546_s11, %s26_s16  }
   0xc   : > { %p611_p5 = por %p34_p2, %p33_p0  ;;  %p617_p6 = por %p40_p4, %p39_p3 }
   0xd   : > { %p84_p7 = scmp.eq.s32.totalorder %s593_s13, 1  ;;  %p90_p8 = scmp.eq.s32.totalorder %s334_s14, 1 }
   0xe   : > { %p335_p9 = scmp.ge.s32.totalorder %s550_s12, 1  ;;  %p97_p10 = scmp.lt.s32.totalorder %s550_s12, 3 }
   0xf   : > { %p624_p11 = por %p84_p7, %p33_p0  ;;  %p628_p12 = por %p90_p8, %p39_p3 }
  0x10   : > { %p632_p13 = pnand %p335_p9, %p97_p10  ;;  %s109_s26 = sshll.u32 %s724_s1, 4  ;;  %s110_s26 = int_to_ptr.hbm [resolvable:$true] %s109_s26 }
  0x11   : > { %s552_s27 = smov [#allocation5]   ;;  %p380_p3 = scmp.lt.s32.totalorder %s550_s12, 2 }
  0x12   : > { %p367_p1 = pneg %p632_p13  ;;  %s111_s28 = sshll.u32 %s552_s27, 4  ;;  %s112_s28 = int_to_ptr.vmem [resolvable:$true] %s111_s28 }
  0x13   : > { %s122_s29 = sand.u32 1, %s546_s11   ;;  %p648_p7 = pnand %p380_p3, %p611_p5 }
  0x14   : > { %p368_p2 = pnand %p367_p1, %p40_p4  ;;  %s338_s3 = sshll.u32 %s122_s29, 5 }
  0x15   : > { %s354_s4 = sshll.u32 %s550_s12, 5  ;;  %s126_s14 = scalar_lea.vmem [#allocation2], %s338_s3 }
  0x16   : > { %370 = dma.hbm_to_vmem [thread:$0]  (!%p368_p2), %s110_s26, 128, %s112_s28, [#allocation6]  }
  0x17   : > { %s131_s7 = scalar_lea.hbm %s723_s0, %s354_s4  ;;  %s134_s16 = sshll.u32 %s126_s14, 4  ;;  %s135_s16 = int_to_ptr.vmem [resolvable:$true] %s134_s16 }
  0x18   : > { %s132_s8 = sshll.u32 %s131_s7, 4  ;;  %s123_s17 = scalar_lea.sflag [#allocation3], %s122_s29  ;;  %s133_s8 = int_to_ptr.hbm [resolvable:$true] %s132_s8 }
  0x19   : > { %s450_s24 = sshra.s32 %s133_s8, 4  ;;  %p454_p8 = pneg %p648_p7  ;;  %s451_s24 = int_to_ptr.hbm [resolvable:$true] %s450_s24 }
  0x1a   : > { %s452_s19 = scalar_lea.hbm %s451_s24, 32  ;;  %s457_s27 = scalar_lea.hbm %s723_s0, 64 }
  0x1b   : > { %p453_p5 = scmp.ne.s32.totalorder %s451_s24, %s452_s19  ;;  %p458_p1 = scmp.lt.s32.totalorder %s451_s24, %s723_s0 }
  0x1c   : > { %p459_p2 = scmp.lt.s32.totalorder %s457_s27, %s452_s19 }
  0x1d   : > { %p455_p9 = pnand %p454_p8, %p453_p5 }
  0x1e   : > { %p460_p3 = por %p459_p2, %p458_p1 }
  0x1f   : > { %p456_p10 = pneg %p455_p9 }
  0x21   : > { %p461_p0 = pnand %p460_p3, %p456_p10 }
  0x23   : > { %464 = shalt.err (!%p461_p0)
}
  0x24   : > { %s553_s29 = smov 128   ;;  %s554_s3 = smov 8  }
  0x25   : > { %374 = dma.hbm_to_vmem [thread:$0]  (!%p648_p7), %s133_s8, 512, %s135_s16, %s123_s17, %s553_s29, %s553_s29, %s554_s3  }
  0x26   : > { %146 = sbr.rel (%p632_p13) target bundleno = 187 (0xbb), region = 28  ;;  %s669_s5 = sand.u32 (!%p632_p13), 1, %s542_s10  }
  0x27   : > { %s342_s6 = sshll.u32 (!%p632_p13), %s669_s5, 5  ;;  %s149_s7 = scalar_lea.sflag (!%p632_p13), [#allocation3], %s669_s5 }
  0x28   : > { %s152_s14 = scalar_lea.vmem (!%p632_p13), [#allocation2], %s342_s6 }
  0x2b   : > { %525 = dma.done.wait (%p617_p6), %s149_s7, 512  }
  0x2c   : > { %527 = vsyncadd (%p617_p6), %s149_s7, 4294966784 }
  0x2d   : > { %529 = dma.done.wait (%p40_p4), [#allocation6], 128  }
  0x2e   : > { %531 = vsyncadd (%p40_p4), [#allocation6], 4294967168  ;;  %vm184_vm0 = vcmask 64512   ;;  %v183_v0 = vld [vmem:[#allocation5] sm:$0xff]  ;;  %v181_v1 = vld [vmem:[%s152_s14 + $0x10] sm:$0xff]  ;;  %s344_s20 = sshll.u32 %s669_s5, 6 }
  0x2f   : > { %v182_v2 = vld [vmem:[%s152_s14 + $0x18] sm:$0xff]  ;;  %357 = vmatpush.msra.mxu2 %v183_v0  ;;  %358 = vmatpush.msra.mxu3 %v183_v0  ;;  %v179_v3 = vld [vmem:[%s152_s14] sm:$0xff]  ;;  %v180_v4 = vld [vmem:[%s152_s14 + $0x8] sm:$0xff]  ;;  %s355_s23 = sshll.u32 %s593_s13, 6  ;;  %vm226_vm1 = vcmask 261120   ;;  %s178_s17 = scalar_lea.vmem [#allocation7], %s344_s20 }
  0x30   : > { %347 = vmatmul.msk.f32.vlgmr.msra.gmra.mxu2 %vm184_vm0, %v181_v1  ;;  %348 = vmatmul.msk.f32.vlgmr.msra.gmra.mxu3 %vm184_vm0, %v182_v2  ;;  %s247_s16 = scalar_lea.hbm %s725_s2, %s355_s23  ;;  %s248_s24 = sshll.u32 %s178_s17, 4  ;;  %s249_s24 = int_to_ptr.vmem [resolvable:$true] %s248_s24 }
  0x31   : > { %212 = vmatpush.msra.mxu0 %v183_v0  ;;  %356 = vmatpush.msra.mxu1 %v183_v0  ;;  %s250_s19 = sshll.u32 %s247_s16, 4  ;;  %s236_s13 = scalar_lea.sflag [#allocation4], %s669_s5  ;;  %s251_s19 = int_to_ptr.hbm [resolvable:$true] %s250_s19 }
  0x32   : > { %345 = vmatmul.msk.f32.vlgmr.msra.gmra.mxu0 %vm184_vm0, %v179_v3  ;;  %346 = vmatmul.msk.f32.vlgmr.msra.gmra.mxu1 %vm184_vm0, %v180_v4  ;;  %s494_s25 = sshra.s32 %s251_s19, 4  ;;  %s500_s4 = scalar_lea.hbm %s725_s2, 128  ;;  %s495_s25 = int_to_ptr.hbm [resolvable:$true] %s494_s25 }
  0x33   : > { %s496_s26 = scalar_lea.hbm %s495_s25, 64  ;;  %p501_p0 = scmp.lt.s32.totalorder %s495_s25, %s725_s2 }
  0x34   : > { %p497_p4 = scmp.ne.s32.totalorder %s495_s25, %s496_s26  ;;  %p502_p7 = scmp.lt.s32.totalorder %s500_s4, %s496_s26 }
  0x36   : > { %p498_p6 = pnand %p497_p4, %p624_p11  ;;  %p503_p5 = por %p502_p7, %p501_p0 }
  0x38   : > { %p499_p13 = pneg %p498_p6 }
  0x3a   : > { %p504_p8 = pnand %p503_p5, %p499_p13 }
  0xaf   : > { %v214_v5 = vpop.f32.mrf.mxu0  ;;  %v217_v6 = vpop.f32.mrf.mxu1 }
  0xb0   : > { %227 = vst.msk [vmem:[%s178_s17] sm:$0xff] %vm226_vm1, %v214_v5 }
  0xb1   : > { %228 = vst.msk [vmem:[%s178_s17 + $0x8] sm:$0xff] %vm226_vm1, %v214_v5 }
  0xb2   : > { %229 = vst.msk [vmem:[%s178_s17 + $0x10] sm:$0xff] %vm226_vm1, %v217_v6 }
  0xb3   : > { %230 = vst.msk [vmem:[%s178_s17 + $0x18] sm:$0xff] %vm226_vm1, %v217_v6  ;;  %v220_v7 = vpop.f32.mrf.mxu2  ;;  %v223_v8 = vpop.f32.mrf.mxu3 }
  0xb4   : > { %231 = vst.msk [vmem:[%s178_s17 + $0x20] sm:$0xff] %vm226_vm1, %v220_v7 }
  0xb5   : > { %232 = vst.msk [vmem:[%s178_s17 + $0x28] sm:$0xff] %vm226_vm1, %v220_v7 }
  0xb6   : > { %233 = vst.msk [vmem:[%s178_s17 + $0x30] sm:$0xff] %vm226_vm1, %v223_v8 }
  0xb7   : > { %234 = vst.msk [vmem:[%s178_s17 + $0x38] sm:$0xff] %vm226_vm1, %v223_v8 }
  0xb8   : > { %507 = shalt.err (!%p504_p8)
}
  0xb9   : > { %s555_s5 = smov 128   ;;  %s556_s6 = smov 8  }
  0xba   : > { %365 = dma.vmem_to_hbm [thread:$0]  (%p624_p11), %s249_s24, 1024, %s251_s19, %s236_s13, %s555_s5, %s555_s5, %s556_s6  }
  0xbb PF: > { %s265_s7 = sand.u32 1, %s538_s9   ;;  %p732_p9 = scmp.ge.s32.totalorder %s550_s12, 2 }
  0xbc   : > { %s266_s14 = scalar_lea.sflag [#allocation4], %s265_s7 }
  0xbd   : > { %p376_p10 = pnand %p732_p9, %p628_p12 }
  0xbf   : > { %p377_p1 = pneg %p376_p10 }
  0xc1   : > { %533 = dma.done.wait (%p377_p1), %s266_s14, 1024  }
  0xc2   : > { %535 = vsyncadd (%p377_p1), %s266_s14, 4294966272  ;;  %p16_p2 = scmp.ge.s32.totalorder %s597_s15, 4   ;;  %s733_s9 = smov %s542_s10 }
  0xc3   : > { %s734_s10 = smov %s546_s11  ;;  %s735_s11 = smov %s609_s18 }
  0xc4   : > { %s736_s12 = smov %s597_s15  ;;  %18 = sbr.rel (!%p16_p2) target bundleno = 6 (0x6), region = 77 }
  0xc9   :  { %272 = vsyncpa [#allocation3], 1 }
  0xca   :  { %274 = vsyncpa [#allocation3 + $0x1], 1 }
  0xcb   :  { %275 = vsyncpa [#allocation6], 1 }
  0xcc   :  { %276 = vsyncpa [#allocation4], 1 }
  0xcd   :  { %278 = vsyncpa [#allocation4 + $0x1], 1 }

</bundles_post_ra>
